<compile_context>
chip_gen: v5e
topology: v5e:2x2
jax: 0.10.0
libtpu: 0.0.40
codegen_flags: <defaults>
</compile_context>

<pallas_src>
import functools
import math

import jax
import jax.numpy as jnp
from jax.experimental import pallas as pl
from jax.experimental.pallas import tpu as pltpu


def _round_up(x, m):
    return (x + m - 1) // m * m


def _cdiv(a, b):
    return (a + b - 1) // b


def _vmem_budget():
    """(per-tile f32 working-set target, vmem_limit_bytes), generation aware."""
    try:
        cap = pltpu.get_tpu_info().vmem_capacity_bytes
    except Exception:
        cap = None
    if cap is not None and cap >= (100 << 20):   # v5e / v6e: 128 MiB VMEM
        return 12 << 20, 96 << 20
    return 4 << 20, 40 << 20                     # v7x: 64 MiB per TensorCore


def _choose_vocab_chunk(v, max_tv=4096):
    # TODO(synk): vocab sizes that are both huge and not a multiple of 128 are
    # kept as one full-width lane block (splitting them without copying the
    # logits would need in-kernel lane masking of a partial vocab chunk).
    if v <= max_tv or v % 128 != 0:
        return v
    for cand in range(max_tv, 127, -128):
        if v % cand == 0:
            return cand
    return v


def _choose_row_tile(n, tv, tile_budget):
    """Pick (row tile tm, number of row blocks)."""
    tm_cap = int(tile_budget // (tv * 4))
    tm_cap = max(16, min(tm_cap, 2048))
    # Keep >= 2 row blocks when there is enough work so both v7x TensorCores
    # get rows (harmless on single-TC v5e/v6e).
    if n >= 256:
        tm_cap = min(tm_cap, _round_up(_cdiv(n, 2), 16))
    if n <= tm_cap:
        return n, 1                       # one full-height block, no padding
    tm_cap -= tm_cap % 16
    tm_cap = max(tm_cap, 16)
    # Prefer a row tile that divides N exactly: no partial final block at all.
    floor = max(64, tm_cap // 4)
    for cand in range(tm_cap, floor - 1, -16):
        if n % cand == 0:
            return cand, n // cand
    return tm_cap, _cdiv(n, tm_cap)       # ragged: clipped partial final block


def _label_smoothing_kernel(target_ref, pred_ref, loss_ref,
                            m_sc, l_sc, wx_sc, *,
                            vocab_size, chunk_size, smoothing, pad_idx):
    """Per-row label-smoothing KL loss with a vocab-chunked online logsumexp.

    target_ref: (TM, 1)  int32    -- target token id per row
    pred_ref:   (TM, TV) any      -- raw logits chunk (cast to f32 in-kernel)
    loss_ref:   (TM, 1)  float32  -- KL(true_dist || softmax) per row (0 for
                                     pad / padded rows)
    m/l/wx scratch: (TM, 1) f32 running max / running Σexp / running Σ w·x
    """
    confidence = 1.0 - smoothing
    eps = smoothing / (vocab_size - 2)
    # Compile-time entropy of the smoothed target distribution (exactly V-2
    # eps entries: pad column excluded, target column replaced by confidence).
    const_entropy = 0.0
    if confidence > 0.0:
        const_entropy += confidence * math.log(confidence)
    if eps > 0.0:
        const_entropy += (vocab_size - 2) * eps * math.log(eps)
    pad_chunk = pad_idx // chunk_size      # static
    pad_local = pad_idx % chunk_size       # static

    k = pl.program_id(1)
    nk = pl.num_programs(1)

    @pl.when(k == 0)
    def _():
        m_sc[...] = jnp.full(m_sc.shape, -jnp.inf, jnp.float32)
        l_sc[...] = jnp.zeros(l_sc.shape, jnp.float32)
        wx_sc[...] = jnp.zeros(wx_sc.shape, jnp.float32)

    x = pred_ref[...].astype(jnp.float32)              # (TM, TV) f32 math
    tgt = target_ref[...]                               # (TM, 1) int32
    tm, tv = x.shape

    # --- online logsumexp over the vocab (lane) axis -------------------------
    m_prev = m_sc[...]
    m_new = jnp.maximum(m_prev, jnp.max(x, axis=1, keepdims=True))
    alpha = jnp.exp(m_prev - m_new)
    l_sc[...] = alpha * l_sc[...] + jnp.sum(jnp.exp(x - m_new),
                                            axis=1, keepdims=True)
    m_sc[...] = m_new

    # --- Σ_v true_dist[v] · x[v]  (single fused weighted reduction) ----------
    # Chunk-local columns: shift the target (O(TM)) instead of the iota (O(TM·TV)).
    col = jax.lax.broadcasted_iota(jnp.int32, (tm, tv), 1)
    tgt_local = tgt - k * chunk_size
    w = jnp.where(col == tgt_local, confidence, eps)
    wx_sc[...] += jnp.sum(w * x, axis=1, keepdims=True)

    # The pad column carries weight 0, not eps: correct it only in the single
    # chunk that contains pad_idx (no per-element pad select in other chunks).
    if eps != 0.0:
        @pl.when(k == pad_chunk)
        def _():
            wx_sc[...] += (-eps) * x[:, pad_local:pad_local + 1]

    @pl.when(k == nk - 1)
    def _():
        lse = m_sc[...] + jnp.log(l_sc[...])
        cross = wx_sc[...] - lse                 # Σ true_dist == 1
        keep = tgt != pad_idx
        # select (not multiply) so garbage in padded / partial-block rows can
        # never leak a NaN into the masked-out result.
        loss_ref[...] = jnp.where(keep, const_entropy - cross, 0.0)


def label_smoothing_loss(pred, target, *, smoothing=0.1, pad_idx=0,
                         block_rows=None, block_vocab=None):
    """pred: (B, S, V) float (f32/bf16); target: (B, S) int. Returns a scalar."""
    b, s, v = pred.shape
    n = b * s

    tile_budget, vmem_limit = _vmem_budget()
    tv = block_vocab if block_vocab is not None else _choose_vocab_chunk(v)
    assert v % tv == 0, "vocab chunk must divide V"
    if block_rows is not None:
        tm, n_blocks = block_rows, _cdiv(n, block_rows)
    else:
        tm, n_blocks = _choose_row_tile(n, tv, tile_budget)
    n_pad = tm * n_blocks

    # Native dtype, no (N, V) logits copy: only the tiny (N, 1) targets are
    # padded when the final row block is ragged; the final logits block is a
    # clipped partial read whose extra rows are masked to 0 inside the kernel.
    pred2 = pred.reshape(n, v)
    tgt2 = target.reshape(n, 1).astype(jnp.int32)
    if n_pad != n:
        tgt2 = jnp.concatenate(
            [tgt2, jnp.full((n_pad - n, 1), pad_idx, jnp.int32)], axis=0)

    kernel = functools.partial(
        _label_smoothing_kernel,
        vocab_size=v, chunk_size=tv, smoothing=smoothing, pad_idx=pad_idx)

    row_loss = pl.pallas_call(
        kernel,
        out_shape=jax.ShapeDtypeStruct((n_pad, 1), jnp.float32),
        grid_spec=pltpu.PrefetchScalarGridSpec(
            num_scalar_prefetch=0,
            grid=(n_blocks, v // tv),
            in_specs=[
                pl.BlockSpec((tm, 1), lambda i, k: (i, 0)),    # target ids
                pl.BlockSpec((tm, tv), lambda i, k: (i, k)),   # logits chunk
            ],
            out_specs=pl.BlockSpec((tm, 1), lambda i, k: (i, 0)),
            scratch_shapes=[
                pltpu.VMEM((tm, 1), jnp.float32),   # running max
                pltpu.VMEM((tm, 1), jnp.float32),   # running Σ exp
                pltpu.VMEM((tm, 1), jnp.float32),   # running Σ w·x
            ],
        ),
        compiler_params=pltpu.CompilerParams(
            dimension_semantics=("parallel", "arbitrary"),
            vmem_limit_bytes=vmem_limit),
    )(tgt2, pred2)

    # Tiny glue reduction: pad / padded rows are already exactly 0, so a plain
    # sum divided by the non-pad count reproduces loss[mask].mean().
    mask = target.reshape(-1) != pad_idx
    count = jnp.sum(mask).astype(jnp.float32)
    return jnp.sum(row_loss) / jnp.maximum(count, 1.0)


def _reference(pred, target, *, smoothing=0.1, pad_idx=0):
    """Pure-JAX replica of the PyTorch forward for a sanity check."""
    b, s, v = pred.shape
    pred = pred.reshape(-1, v).astype(jnp.float32)
    target = target.reshape(-1)
    confidence = 1.0 - smoothing
    eps = smoothing / (v - 2)
    true_dist = jnp.full_like(pred, eps)
    true_dist = true_dist.at[jnp.arange(pred.shape[0]), target].set(confidence)
    true_dist = true_dist.at[:, pad_idx].set(0.0)
    mask = (target != pad_idx)
    true_dist = true_dist * mask[:, None]
    logp = jax.nn.log_softmax(pred, axis=1)
    kl = jnp.where(true_dist > 0,
                   true_dist * (jnp.log(jnp.where(true_dist > 0, true_dist, 1.0)) - logp),
                   0.0)
    row = kl.sum(axis=1)
    return jnp.sum(row * mask) / jnp.sum(mask)


if __name__ == "__main__":
    key = jax.random.PRNGKey(0)
    k1, k2, k3, k4, k5, k6 = jax.random.split(key, 6)

    # Case 1: f32 logits, shapes from the original spec; single row block.
    B, S, V = 2, 8, 128
    pred = jax.random.normal(k1, (B, S, V), dtype=jnp.float32)
    target = jax.random.randint(k2, (B, S), 0, V, dtype=jnp.int32)
    loss = label_smoothing_loss(pred, target, smoothing=0.1, pad_idx=0)
    jax.block_until_ready(loss)
    ref = _reference(pred, target, smoothing=0.1, pad_idx=0)
    assert jnp.allclose(loss, ref, rtol=1e-4, atol=1e-5), (loss, ref)

    # Case 2: bf16 logits + odd row count (native-dtype DMA, full-height block).
    B2, S2, V2 = 3, 7, 128
    pred2 = jax.random.normal(k3, (B2, S2, V2), dtype=jnp.bfloat16)
    target2 = jax.random.randint(k4, (B2, S2), 0, V2, dtype=jnp.int32)
    loss2 = label_smoothing_loss(pred2, target2, smoothing=0.1, pad_idx=0)
    jax.block_until_ready(loss2)
    ref2 = _reference(pred2, target2, smoothing=0.1, pad_idx=0)
    assert jnp.allclose(loss2, ref2, rtol=1e-3, atol=1e-4), (loss2, ref2)

    # Case 3: forced small blocks to exercise vocab chunking (online lse +
    # pad-chunk gating), multiple row blocks, a ragged final row block (no
    # logits padding) and explicit pad targets -- the paths large models hit.
    B3, S3, V3 = 2, 37, 256
    pred3 = jax.random.normal(k5, (B3, S3, V3), dtype=jnp.float32)
    target3 = jax.random.randint(k6, (B3, S3), 1, V3, dtype=jnp.int32)
    target3 = target3.at[0, :3].set(0)        # a few pad rows
    loss3 = label_smoothing_loss(pred3, target3, smoothing=0.1, pad_idx=0,
                                 block_rows=16, block_vocab=128)
    jax.block_until_ready(loss3)
    ref3 = _reference(pred3, target3, smoothing=0.1, pad_idx=0)
    assert jnp.allclose(loss3, ref3, rtol=1e-4, atol=1e-5), (loss3, ref3)

    print("KERNEL_OK")
</pallas_src>

<mosaic_0001>
module attributes {stable_mosaic.version = 11 : i64} {
  func.func @_label_smoothing_kernel(%arg0: i32, %arg1: i32, %arg2: memref<16x1xi32, #tpu.memory_space<vmem>>, %arg3: memref<16x128xf32, #tpu.memory_space<vmem>>, %arg4: memref<16x1xf32, #tpu.memory_space<vmem>>, %arg5: memref<16x1xf32, #tpu.memory_space<vmem>>, %arg6: memref<16x1xf32, #tpu.memory_space<vmem>>, %arg7: memref<16x1xf32, #tpu.memory_space<vmem>>) attributes {dimension_semantics = [#tpu.dimension_semantics<parallel>, #tpu.dimension_semantics<arbitrary>], iteration_bounds = array<i64: 1, 1>, scalar_prefetch = 0 : i64, scratch_operands = 3 : i64, tpu.core_type = #tpu.core_type<tc>, window_params = [{transform_indices = @transform_0, window_bounds = array<i64: 16, 1>}, {transform_indices = @transform_1, window_bounds = array<i64: 16, 128>}, {transform_indices = @transform_2, window_bounds = array<i64: 16, 1>}]} {
    %c0_i32 = arith.constant 0 : i32
    %0 = arith.cmpi eq, %arg1, %c0_i32 : i32
    %1 = arith.extui %0 : i1 to i32
    %c0_i32_0 = arith.constant 0 : i32
    %2 = arith.cmpi ne, %1, %c0_i32_0 : i32
    scf.if %2 {
      %cst_24 = arith.constant 0xFF800000 : f32
      %42 = vector.broadcast %cst_24 : f32 to vector<16x1xf32>
      %c0_25 = arith.constant 0 : index
      %c0_26 = arith.constant 0 : index
      %43 = vector.load %arg5[%c0_25, %c0_26] : memref<16x1xf32, #tpu.memory_space<vmem>>, vector<16x1xf32>
      tpu.vector_store %arg5[%c0_25, %c0_26], %42 {strides = array<i32>} : memref<16x1xf32, #tpu.memory_space<vmem>>, vector<16x1xf32>,
      %cst_27 = arith.constant 0.000000e+00 : f32
      %44 = vector.broadcast %cst_27 : f32 to vector<16x1xf32>
      %c0_28 = arith.constant 0 : index
      %c0_29 = arith.constant 0 : index
      %45 = vector.load %arg6[%c0_28, %c0_29] : memref<16x1xf32, #tpu.memory_space<vmem>>, vector<16x1xf32>
      tpu.vector_store %arg6[%c0_28, %c0_29], %44 {strides = array<i32>} : memref<16x1xf32, #tpu.memory_space<vmem>>, vector<16x1xf32>,
      %cst_30 = arith.constant 0.000000e+00 : f32
      %46 = vector.broadcast %cst_30 : f32 to vector<16x1xf32>
      %c0_31 = arith.constant 0 : index
      %c0_32 = arith.constant 0 : index
      %47 = vector.load %arg7[%c0_31, %c0_32] : memref<16x1xf32, #tpu.memory_space<vmem>>, vector<16x1xf32>
      tpu.vector_store %arg7[%c0_31, %c0_32], %46 {strides = array<i32>} : memref<16x1xf32, #tpu.memory_space<vmem>>, vector<16x1xf32>,
    } else {
    }
    %c0 = arith.constant 0 : index
    %c0_1 = arith.constant 0 : index
    %3 = vector.load %arg3[%c0, %c0_1] : memref<16x128xf32, #tpu.memory_space<vmem>>, vector<16x128xf32>
    %c0_2 = arith.constant 0 : index
    %c0_3 = arith.constant 0 : index
    %4 = vector.load %arg2[%c0_2, %c0_3] : memref<16x1xi32, #tpu.memory_space<vmem>>, vector<16x1xi32>
    %c0_4 = arith.constant 0 : index
    %c0_5 = arith.constant 0 : index
    %5 = vector.load %arg5[%c0_4, %c0_5] : memref<16x1xf32, #tpu.memory_space<vmem>>, vector<16x1xf32>
    %cst = arith.constant dense<0xFF800000> : vector<16xf32>
    %6 = vector.multi_reduction <maximumf>, %3, %cst [1] : vector<16x128xf32> to vector<16xf32>
    %7 = vector.shape_cast %6 : vector<16xf32> to vector<16x1xf32>
    %8 = arith.maximumf %5, %7 : vector<16x1xf32>
    %9 = arith.subf %5, %8 : vector<16x1xf32>
    %10 = math.exp %9 : vector<16x1xf32>
    %c0_6 = arith.constant 0 : index
    %c0_7 = arith.constant 0 : index
    %11 = vector.load %arg6[%c0_6, %c0_7] : memref<16x1xf32, #tpu.memory_space<vmem>>, vector<16x1xf32>
    %12 = arith.mulf %10, %11 : vector<16x1xf32>
    %13 = vector.broadcast %8 : vector<16x1xf32> to vector<16x128xf32>
    %14 = arith.subf %3, %13 : vector<16x128xf32>
    %15 = math.exp %14 : vector<16x128xf32>
    %cst_8 = arith.constant dense<0.000000e+00> : vector<16xf32>
    %16 = vector.multi_reduction <add>, %15, %cst_8 [1] : vector<16x128xf32> to vector<16xf32>
    %17 = vector.shape_cast %16 : vector<16xf32> to vector<16x1xf32>
    %18 = arith.addf %12, %17 : vector<16x1xf32>
    %c0_9 = arith.constant 0 : index
    %c0_10 = arith.constant 0 : index
    %19 = vector.load %arg6[%c0_9, %c0_10] : memref<16x1xf32, #tpu.memory_space<vmem>>, vector<16x1xf32>
    tpu.vector_store %arg6[%c0_9, %c0_10], %18 {strides = array<i32>} : memref<16x1xf32, #tpu.memory_space<vmem>>, vector<16x1xf32>,
    %c0_11 = arith.constant 0 : index
    %c0_12 = arith.constant 0 : index
    %20 = vector.load %arg5[%c0_11, %c0_12] : memref<16x1xf32, #tpu.memory_space<vmem>>, vector<16x1xf32>
    tpu.vector_store %arg5[%c0_11, %c0_12], %8 {strides = array<i32>} : memref<16x1xf32, #tpu.memory_space<vmem>>, vector<16x1xf32>,
    %21 = tpu.iota {dimensions = array<i32: 1>} : vector<16x128xi32>
    %c128_i32 = arith.constant 128 : i32
    %22 = arith.muli %arg1, %c128_i32 : i32
    %23 = vector.broadcast %22 : i32 to vector<16x1xi32>
    %24 = arith.subi %4, %23 : vector<16x1xi32>
    %25 = vector.broadcast %24 : vector<16x1xi32> to vector<16x128xi32>
    %26 = arith.cmpi eq, %21, %25 : vector<16x128xi32>
    %cst_13 = arith.constant 0.899999976 : f32
    %cst_14 = arith.constant 7.93650805E-4 : f32
    %27 = vector.broadcast %cst_13 : f32 to vector<16x128xf32>
    %28 = vector.broadcast %cst_14 : f32 to vector<16x128xf32>
    %29 = arith.select %26, %27, %28 : vector<16x128xi1>, vector<16x128xf32>
    %c0_15 = arith.constant 0 : index
    %c0_16 = arith.constant 0 : index
    %30 = vector.load %arg7[%c0_15, %c0_16] : memref<16x1xf32, #tpu.memory_space<vmem>>, vector<16x1xf32>
    %31 = arith.mulf %29, %3 : vector<16x128xf32>
    %cst_17 = arith.constant dense<0.000000e+00> : vector<16xf32>
    %32 = vector.multi_reduction <add>, %31, %cst_17 [1] : vector<16x128xf32> to vector<16xf32>
    %33 = vector.shape_cast %32 : vector<16xf32> to vector<16x1xf32>
    %34 = arith.addf %30, %33 : vector<16x1xf32>
    %c0_18 = arith.constant 0 : index
    %c0_19 = arith.constant 0 : index
    %35 = vector.load %arg7[%c0_18, %c0_19] : memref<16x1xf32, #tpu.memory_space<vmem>>, vector<16x1xf32>
    tpu.vector_store %arg7[%c0_18, %c0_19], %34 {strides = array<i32>} : memref<16x1xf32, #tpu.memory_space<vmem>>, vector<16x1xf32>,
    %c0_i32_20 = arith.constant 0 : i32
    %36 = arith.cmpi eq, %arg1, %c0_i32_20 : i32
    %37 = arith.extui %36 : i1 to i32
    %c0_i32_21 = arith.constant 0 : i32
    %38 = arith.cmpi ne, %37, %c0_i32_21 : i32
    scf.if %38 {
      %c0_24 = arith.constant 0 : index
      %c0_25 = arith.constant 0 : index
      %42 = vector.load %arg7[%c0_24, %c0_25] : memref<16x1xf32, #tpu.memory_space<vmem>>, vector<16x1xf32>
      %43 = vector.extract_strided_slice %3 {offsets = [0, 0], sizes = [16, 1], strides = [1, 1]} : vector<16x128xf32> to vector<16x1xf32>
      %cst_26 = arith.constant -7.93650805E-4 : f32
      %44 = vector.broadcast %cst_26 : f32 to vector<16x1xf32>
      %45 = arith.mulf %44, %43 : vector<16x1xf32>
      %46 = arith.addf %42, %45 : vector<16x1xf32>
      %c0_27 = arith.constant 0 : index
      %c0_28 = arith.constant 0 : index
      %47 = vector.load %arg7[%c0_27, %c0_28] : memref<16x1xf32, #tpu.memory_space<vmem>>, vector<16x1xf32>
      tpu.vector_store %arg7[%c0_27, %c0_28], %46 {strides = array<i32>} : memref<16x1xf32, #tpu.memory_space<vmem>>, vector<16x1xf32>,
    } else {
    }
    %c0_i32_22 = arith.constant 0 : i32
    %39 = arith.cmpi eq, %arg1, %c0_i32_22 : i32
    %40 = arith.extui %39 : i1 to i32
    %c0_i32_23 = arith.constant 0 : i32
    %41 = arith.cmpi ne, %40, %c0_i32_23 : i32
    scf.if %41 {
      %c0_24 = arith.constant 0 : index
      %c0_25 = arith.constant 0 : index
      %42 = vector.load %arg5[%c0_24, %c0_25] : memref<16x1xf32, #tpu.memory_space<vmem>>, vector<16x1xf32>
      %c0_26 = arith.constant 0 : index
      %c0_27 = arith.constant 0 : index
      %43 = vector.load %arg6[%c0_26, %c0_27] : memref<16x1xf32, #tpu.memory_space<vmem>>, vector<16x1xf32>
      %44 = math.log %43 : vector<16x1xf32>
      %45 = arith.addf %42, %44 : vector<16x1xf32>
      %c0_28 = arith.constant 0 : index
      %c0_29 = arith.constant 0 : index
      %46 = vector.load %arg7[%c0_28, %c0_29] : memref<16x1xf32, #tpu.memory_space<vmem>>, vector<16x1xf32>
      %47 = arith.subf %46, %45 : vector<16x1xf32>
      %c0_i32_30 = arith.constant 0 : i32
      %48 = vector.broadcast %c0_i32_30 : i32 to vector<16x1xi32>
      %49 = arith.cmpi ne, %4, %48 : vector<16x1xi32>
      %cst_31 = arith.constant -0.808711171 : f32
      %50 = vector.broadcast %cst_31 : f32 to vector<16x1xf32>
      %51 = arith.subf %50, %47 : vector<16x1xf32>
      %cst_32 = arith.constant 0.000000e+00 : f32
      %52 = vector.broadcast %cst_32 : f32 to vector<16x1xf32>
      %53 = arith.select %49, %51, %52 : vector<16x1xi1>, vector<16x1xf32>
      %c0_33 = arith.constant 0 : index
      %c0_34 = arith.constant 0 : index
      %54 = vector.load %arg4[%c0_33, %c0_34] : memref<16x1xf32, #tpu.memory_space<vmem>>, vector<16x1xf32>
      tpu.vector_store %arg4[%c0_33, %c0_34], %53 {strides = array<i32>} : memref<16x1xf32, #tpu.memory_space<vmem>>, vector<16x1xf32>,
    } else {
    }
    return
  }
  func.func @transform_0(%arg0: i32, %arg1: i32) -> (i32, i32) {
    %c0_i32 = arith.constant 0 : i32
    %c0_i32_0 = arith.constant 0 : i32
    return %arg0, %c0_i32 : i32, i32
  }
  func.func @transform_1(%arg0: i32, %arg1: i32) -> (i32, i32) {
    %c0_i32 = arith.constant 0 : i32
    return %arg0, %arg1 : i32, i32
  }
  func.func @transform_2(%arg0: i32, %arg1: i32) -> (i32, i32) {
    %c0_i32 = arith.constant 0 : i32
    %c0_i32_0 = arith.constant 0 : i32
    return %arg0, %c0_i32 : i32, i32
  }
}

</mosaic_0001>

<bundles_post_ra>
// kernel: tpu_custom_call.1
= control target key start
LH: loop header
LB: loop body
LE: loop exit
PB: predicated region body
PF: predicated region fallthrough
CT: control target
= control target key end

     0   :  { %vm15_vm0 = vcmask 7168   ;;  %v155_v1 = vmov -inf   ;;  %v156_v3 = vmov 0   ;;  %v157_v4 = vmov 0.0   ;;  %s222_s1 = inlined_call_operand.vmem [shape: f32[16,128], index: 1, kind: input, shape index: {}]   ;;  %s223_s0 = inlined_call_operand.vmem [shape: s32[16,1], index: 0, kind: input, shape index: {}]   ;;  %s224_s2 = inlined_call_operand.vmem [shape: f32[16,1], index: 2, kind: output, shape index: {}]  }
   0x1   :  { %v22_v0 = vld [vmem:[%s222_s1] sm:$0xff]  ;;  %16 = vst.msk [vmem:[#allocation2] sm:$0xff] %vm15_vm0, %v155_v1  ;;  %v182_v2 = vld [vmem:[%s222_s1 + $0x8] sm:$0xff]  ;;  %140 = vset.pattern.permute.xlu1 %v156_v3  ;;  %141 = vset.pattern.permute.xlu2 %v156_v3  ;;  %v71_v15 = vlaneseq  ;;  %v158_v18 = vmov 0.0007936508  }
   0x2   :  { %28 = vmax.xlane.f32.xlu0 %v22_v0  ;;  %17 = vst.msk [vmem:[#allocation2 + $0x8] sm:$0xff] %vm15_vm0, %v155_v1  ;;  %v192_v5 = vld [vmem:[%s223_s0] sm:$0xff]  ;;  %v198_v6 = vld [vmem:[%s223_s0 + $0x8] sm:$0xff]  ;;  %v104_v35 = vmul.f32 -0.0007936508, %v22_v0 }
   0x3   :  { %142 = vset.pattern.permute.xlu0 %v156_v3  ;;  %18 = vst.msk [vmem:[#allocation3] sm:$0xff] %vm15_vm0, %v157_v4  ;;  %78 = vperm.xlu2 %141, %v192_v5   ;;  %v72_v16 = vand.u32 127, %v71_v15  ;;  %v105_v54 = vmul.f32 -0.0007936508, %v182_v2  ;;  %vm124_vm3 = vcmp.ne.s32.totalorder %v192_v5, 0  ;;  %vm125_vm4 = vcmp.ne.s32.totalorder %v198_v6, 0 }
   0x4   :  { %19 = vst.msk [vmem:[#allocation3 + $0x8] sm:$0xff] %vm15_vm0, %v157_v4 }
   0x5   :  { %20 = vst.msk [vmem:[#allocation4] sm:$0xff] %vm15_vm0, %v157_v4 }
   0x6   :  { %21 = vst.msk [vmem:[#allocation4 + $0x8] sm:$0xff] %vm15_vm0, %v157_v4 }
   0x8   :  { %v26_v7 = vld [vmem:[#allocation2] sm:$0xff] }
   0x9   :  { %v27_v11 = vld [vmem:[#allocation2 + $0x8] sm:$0xff] }
   0xa   :  { %30 = vmax.xlane.f32.xlu0 %v182_v2  ;;  %v40_v41 = vld [vmem:[#allocation3] sm:$0xff] }
   0xb   :  { %81 = vperm.xlu2 %141, %v198_v6   ;;  %v41_v46 = vld [vmem:[#allocation3 + $0x8] sm:$0xff] }
   0xc   :  { %v87_v32 = vld [vmem:[#allocation4] sm:$0xff] }
   0xd   :  { %v88_v47 = vld [vmem:[#allocation4 + $0x8] sm:$0xff] }
  0x5d   :  { %v79_v17 = vpop.permute.xlu2 %78 }
  0x5e   :  { %vm83_vm1 = vcmp.eq.s32.totalorder %v72_v16, %v79_v17 }
  0x5f   :  { %v85_v19 = vsel %vm83_vm1, 0.9, %v158_v18 }
  0x60   :  { %v89_v20 = vmul.f32 %v85_v19, %v22_v0 }
  0x62   :  { %91 = vadd.xlane.f32.xlu2 %v89_v20 }
  0x65   :  { %v82_v26 = vpop.permute.xlu2 %81 }
  0x66   :  { %vm84_vm2 = vcmp.eq.s32.totalorder %v72_v16, %v82_v26 }
  0x67   :  { %v86_v29 = vsel %vm84_vm2, 0.9, %v158_v18 }
  0x68   :  { %v90_v30 = vmul.f32 %v86_v29, %v182_v2 }
  0x75   :  { %v29_v8 = vpop.xlane.xlu0 %28 }
  0x76   :  { %v32_v9 = vmax.f32 %v26_v7, %v29_v8 }
  0x78   :  { %v34_v10 = vsub.f32 %v26_v7, %v32_v9  ;;  %69 = vst.msk [vmem:[#allocation2] sm:$0xff] %vm15_vm0, %v32_v9  ;;  %46 = vperm.xlu1 %140, %v32_v9  }
  0x7a   :  { %v36_v38 = vmul.f32 1.442695, %v34_v10 }
  0x7d   :  { %v31_v12 = vpop.xlane.xlu0 %30 }
  0x7e   :  { %v33_v13 = vmax.f32 %v27_v11, %v31_v12 }
  0x7f   :  { %v110_v58 = vld [vmem:[#allocation2] sm:$0xff] }
  0x80   :  { %v35_v14 = vsub.f32 %v27_v11, %v33_v13  ;;  %70 = vst.msk [vmem:[#allocation2 + $0x8] sm:$0xff] %vm15_vm0, %v33_v13  ;;  %51 = vperm.xlu1 %140, %v33_v13  }
  0x82   :  { %v38_v39 = vmul.f32 1.442695, %v35_v14 }
  0x87   :  { %v111_v7 = vld [vmem:[#allocation2 + $0x8] sm:$0xff] }
  0xd5   :  { %v92_v33 = vpop.xlane.xlu2 %91 }
  0xd6   :  { %v95_v34 = vadd.f32 %v92_v33, %v87_v32 }
  0xd8   :  { %97 = vst.msk [vmem:[#allocation4] sm:$0xff] %vm15_vm0, %v95_v34 }
  0xdf   :  { %v102_v36 = vld [vmem:[#allocation4] sm:$0xff] }
  0xe0   :  { %v106_v37 = vadd.f32 %v104_v35, %v102_v36 }
  0xe2   :  { %108 = vst.msk [vmem:[#allocation4] sm:$0xff] %vm15_vm0, %v106_v37 }
  0xe9   :  { %v120_v59 = vld [vmem:[#allocation4] sm:$0xff] }
  0xea   :  { %v47_v21 = vpop.permute.xlu1 %46 }
  0xeb   :  { %v54_v22 = vsub.f32 %v22_v0, %v47_v21 }
  0xed   :  { %v56_v23 = vmul.f32 1.442695, %v54_v22 }
  0xef   :  { %143 = vpow2.f32 %v56_v23 }
  0xf2   :  { %v52_v24 = vpop.permute.xlu1 %51 }
  0xf3   :  { %v55_v25 = vsub.f32 %v182_v2, %v52_v24 }
  0xf5   :  { %v144_v27 = vpop.eup %143  ;;  %v58_v28 = vmul.f32 1.442695, %v55_v25 }
  0xf6   :  { %60 = vadd.xlane.f32.xlu0 %v144_v27 }
  0xf7   :  { %145 = vpow2.f32 %v58_v28 }
  0xf8   :  { %147 = vpow2.f32 %v36_v38 }
  0xf9   :  { %149 = vpow2.f32 %v38_v39 }
  0xfd   :  { %v146_v31 = vpop.eup %145 }
  0xfe   :  { %62 = vadd.xlane.f32.xlu1 %v146_v31  ;;  %93 = vadd.xlane.f32.xlu0 %v90_v30  ;;  %v148_v40 = vpop.eup %147 }
  0xff   :  { %v42_v42 = vmul.f32 %v148_v40, %v40_v41  ;;  %v150_v45 = vpop.eup %149 }
 0x100   :  { %v43_v48 = vmul.f32 %v150_v45, %v41_v46 }
 0x169   :  { %v61_v43 = vpop.xlane.xlu0 %60 }
 0x16a   :  { %v64_v44 = vadd.f32 %v61_v43, %v42_v42 }
 0x16c   :  { %67 = vst.msk [vmem:[#allocation3] sm:$0xff] %vm15_vm0, %v64_v44 }
 0x171   :  { %v63_v49 = vpop.xlane.xlu1 %62  ;;  %v94_v50 = vpop.xlane.xlu0 %93 }
 0x172   :  { %v65_v51 = vadd.f32 %v63_v49, %v43_v48  ;;  %v96_v52 = vadd.f32 %v94_v50, %v88_v47 }
 0x173   :  { %v112_v53 = vld [vmem:[#allocation3] sm:$0xff] }
 0x174   :  { %151 = vlog2.f32 %v112_v53  ;;  %68 = vst.msk [vmem:[#allocation3 + $0x8] sm:$0xff] %vm15_vm0, %v65_v51 }
 0x175   :  { %98 = vst.msk [vmem:[#allocation4 + $0x8] sm:$0xff] %vm15_vm0, %v96_v52 }
 0x17a   :  { %v152_v55 = vpop.eup %151 }
 0x17b   :  { %v115_v56 = vmul.f32 0.6931472, %v152_v55  ;;  %v113_v57 = vld [vmem:[#allocation3 + $0x8] sm:$0xff] }
 0x17c   :  { %153 = vlog2.f32 %v113_v57  ;;  %v103_v60 = vld [vmem:[#allocation4 + $0x8] sm:$0xff] }
 0x17d   :  { %v118_v61 = vadd.f32 %v115_v56, %v110_v58  ;;  %v107_v62 = vadd.f32 %v105_v54, %v103_v60 }
 0x17f   :  { %v122_v63 = vsub.f32 %v120_v59, %v118_v61  ;;  %109 = vst.msk [vmem:[#allocation4 + $0x8] sm:$0xff] %vm15_vm0, %v107_v62 }
 0x181   :  { %v126_v0 = vsub.f32 -0.8087112, %v122_v63 }
 0x182   :  { %v154_v1 = vpop.eup %153 }
 0x183   :  { %v128_v3 = vsel %vm124_vm3, %v126_v0, 0.0  ;;  %v117_v4 = vmul.f32 0.6931472, %v154_v1 }
 0x184   :  { %130 = vst.msk [vmem:[%s224_s2] sm:$0xff] %vm15_vm0, %v128_v3 }
 0x185   :  { %v119_v2 = vadd.f32 %v117_v4, %v111_v7 }
 0x186   :  { %v121_v8 = vld [vmem:[#allocation4 + $0x8] sm:$0xff] }
 0x187   :  { %v123_v9 = vsub.f32 %v121_v8, %v119_v2 }
 0x189   :  { %v127_v10 = vsub.f32 -0.8087112, %v123_v9 }
 0x18b   :  { %v129_v11 = vsel %vm125_vm4, %v127_v10, 0.0 }
 0x18c   :  { %131 = vst.msk [vmem:[%s224_s2 + $0x8] sm:$0xff] %vm15_vm0, %v129_v11 }

</bundles_post_ra>
